<compile_context>
chip_gen: v6e
topology: v6e:2x2x1
jax: 0.10.0
libtpu: 0.0.40
codegen_flags: <defaults>
</compile_context>

<pallas_src>
import math

import jax
import jax.numpy as jnp
from jax.experimental import pallas as pl
from jax.experimental.pallas import tpu as pltpu

EPS = 1e-5  # torch.nn.LayerNorm default


def _downsample_kernel(a_ref, b_ref, w0_ref, w1_ref, csb_ref, o_ref):
    # a_ref / b_ref: (t_r, out_lon, 2C)  native dtype, (di=0, di=1) halves of the patch
    # w0_ref/w1_ref: (2C, Cp)            gamma-folded weight halves (native dtype)
    # csb_ref:       (2, Cp) f32         row0 = colsum(gamma*W), row1 = beta @ W
    # o_ref:         (t_r*out_lon, Cp) or (t_r, out_lon, Cp)
    t_r, t_lon, c2 = a_ref.shape
    rows = t_r * t_lon
    a = a_ref[...].reshape(rows, c2)
    b = b_ref[...].reshape(rows, c2)

    # Row statistics in f32 (sum / sum-of-squares form) so the MXU below can consume
    # a/b directly in their native dtype -- no centered / scaled f32 operand copies.
    af = a.astype(jnp.float32)
    bf = b.astype(jnp.float32)
    inv_n = 1.0 / (2.0 * c2)  # 1 / (4C)
    s1 = jnp.sum(af, axis=-1, keepdims=True) + jnp.sum(bf, axis=-1, keepdims=True)
    s2 = (jnp.sum(af * af, axis=-1, keepdims=True)
          + jnp.sum(bf * bf, axis=-1, keepdims=True))
    mean = s1 * inv_n
    var = jnp.maximum(s2 * inv_n - mean * mean, 0.0)
    inv = jax.lax.rsqrt(var + EPS)

    # MXU on native-dtype operands; all per-row scaling happens on the (rows, Cp)
    # f32 accumulator: out = (x@Wf - mean*colsum(Wf)) * inv + beta@W.
    acc = jnp.dot(a, w0_ref[...], preferred_element_type=jnp.float32)
    acc = acc + jnp.dot(b, w1_ref[...], preferred_element_type=jnp.float32)
    csb = csb_ref[...]
    colsum = csb[0:1, :]
    bias = csb[1:2, :]
    acc = (acc - mean * colsum) * inv + bias
    o_ref[...] = acc.reshape(o_ref.shape).astype(o_ref.dtype)


def _round_up(x, m):
    return (x + m - 1) // m * m


def _cdiv(a, b):
    return -(-a // b)


def _pick_row_tile(R, out_lon, bytes_per_row, budget_bytes, sublanes):
    """Rows-per-grid-step: as large as the VMEM budget allows, with t*out_lon
    sublane-aligned (keeps the in-kernel flatten and the 2-D store free), and an
    even step count so v7x's two TensorCores stay balanced."""
    align = sublanes // math.gcd(out_lon, sublanes)
    t_max = max(1, int(budget_bytes // max(bytes_per_row, 1)))
    t_max = min(t_max, R)
    if t_max >= align:
        t_max = (t_max // align) * align

    g = _cdiv(R, t_max)
    if g == 1 and R >= 2 * align:
        g = 2                      # give both v7x TensorCores work
    elif g > 1 and g % 2:
        g += 1                     # avoid a 2:1 TensorCore imbalance
    t = _cdiv(R, g)
    if align > 1 and t > align:
        t_up = _cdiv(t, align) * align
        t = t_up if t_up <= t_max else max(align, (t // align) * align)
    t = max(1, min(t, R))
    return t, _cdiv(R, t)


def downsample2d(x, gamma, beta, w, input_resolution, output_resolution):
    """x: (B, N, C) or (B, in_lat, in_lon, C) channels-last.
    gamma, beta: (4C,);  w: (4C, 2C) (= torch linear.weight.T).
    Returns (B, out_lat, out_lon, 2C)."""
    in_lat, in_lon = input_resolution
    out_lat, out_lon = output_resolution

    if x.ndim == 3:
        B, N, C = x.shape
        x = x.reshape(B, in_lat, in_lon, C)
    else:
        B, n_lat, n_lon, C = x.shape
        assert (n_lat, n_lon) == (in_lat, in_lon)

    h_pad = out_lat * 2 - in_lat
    w_pad = out_lon * 2 - in_lon
    assert h_pad >= 0 and w_pad >= 0
    if h_pad or w_pad:
        # TODO(synk): fuse the spatial zero-pad into the kernel via boundary masking;
        # this extra HBM pass only triggers for non-even resolutions.
        pad_top = h_pad // 2
        pad_left = w_pad // 2
        x = jnp.pad(x, ((0, 0), (pad_top, h_pad - pad_top),
                        (pad_left, w_pad - pad_left), (0, 0)))

    # Free (no-copy) reshape: (B, 2*out_lat, 2*out_lon, C) -> (B*out_lat, 2, out_lon, 2C)
    # Row r=(b,i), index di, column j holds the (dj=0,dj=1) features of patch (i,j).
    C2 = 2 * C
    R = B * out_lat
    x3 = x.reshape(R, 2, out_lon, C2)

    # Fold LayerNorm affine into the linear layer:
    #   out = (x - mu)*inv @ (gamma*W) + beta@W
    #       = ((x @ Wf) - mu * colsum(Wf)) * inv + beta@W
    Cout = w.shape[1]
    w_f32 = w.astype(jnp.float32)
    wf = (w_f32 * gamma.astype(jnp.float32)[:, None]).astype(x.dtype)
    bias = beta.astype(jnp.float32) @ w_f32  # (Cout,) f32

    # Lane-dense output: pad output feature dim to a multiple of 128.
    Cp = _round_up(Cout, 128)
    if Cp != Cout:
        # TODO(synk): callers that can consume the padded Cp width could skip the
        # wrapper-side slice below and its extra HBM pass.
        wf = jnp.pad(wf, ((0, 0), (0, Cp - Cout)))
        bias = jnp.pad(bias, (0, Cp - Cout))
    w0 = wf[:C2]   # rows for the di=0 half of the 4C features
    w1 = wf[C2:]   # rows for the di=1 half
    # colsum of the *as-used* (cast, padded) weight so the mean correction is exact.
    colsum = jnp.sum(wf.astype(jnp.float32), axis=0)          # (Cp,)
    csb = jnp.stack([colsum, bias]).astype(jnp.float32)        # (2, Cp)

    in_isz = x.dtype.itemsize
    out_isz = x.dtype.itemsize
    w_isz = wf.dtype.itemsize

    # Per-lat-row VMEM footprint: a/b double-buffered, output double-buffered,
    # plus the in-kernel f32 stat temporaries and the f32 accumulator.
    row_in = out_lon * C2 * in_isz
    row_out = out_lon * Cp * out_isz
    bytes_per_row = (2 * 2 * row_in          # a, b pipelined (x2 buffers each)
                     + 2 * row_out           # output pipelined
                     + 2 * out_lon * C2 * 4  # f32 upcasts for the stats
                     + out_lon * Cp * 4)     # f32 accumulator
    # Grid-invariant weights stay resident (Pallas never re-fetches them); count
    # both pipeline buffers anyway.
    resident = 2 * (2 * C2 * Cp * w_isz) + 2 * 2 * Cp * 4

    # Per-generation VMEM sizing: 128 MiB class (v5e/v6e) gets big tiles, 64 MiB
    # v7x keeps ~16 MiB headroom for Mosaic internal scratch.
    try:
        vmem_cap = int(pltpu.get_tpu_info().vmem_capacity_bytes)
    except Exception:
        vmem_cap = 64 * 1024 * 1024  # conservative (v7x-class) fallback
    vmem_limit = min(max(vmem_cap - 16 * 1024 * 1024, 32 * 1024 * 1024),
                     112 * 1024 * 1024)
    budget = max((vmem_limit - resident) * 2 // 3, 4 * 1024 * 1024)

    sublanes = 8 * max(1, 4 // in_isz)       # f32: 8, bf16: 16
    t_r, steps = _pick_row_tile(R, out_lon, bytes_per_row, budget, sublanes)

    rows_per_step = t_r * out_lon
    M = R * out_lon
    # Prefer a flat 2-D (rows, Cp) output (no in-kernel reshape, lane-dense stores);
    # fall back to 3-D blocks when the flattened tile is not sublane-aligned.
    flat_out = (rows_per_step % 8 == 0) or (t_r == R)
    if flat_out:
        out_shape = jax.ShapeDtypeStruct((M, Cp), x.dtype)
        out_spec = pl.BlockSpec((rows_per_step, Cp), lambda i: (i, 0))
    else:
        out_shape = jax.ShapeDtypeStruct((R, out_lon, Cp), x.dtype)
        out_spec = pl.BlockSpec((t_r, out_lon, Cp), lambda i: (i, 0, 0))

    cost = pl.CostEstimate(
        flops=2 * M * (2 * C2) * Cout,
        transcendentals=M,
        bytes_accessed=M * 2 * C2 * in_isz + M * Cp * out_isz
        + 2 * C2 * Cp * w_isz,
    )

    out = pl.pallas_call(
        _downsample_kernel,
        out_shape=out_shape,
        grid_spec=pltpu.PrefetchScalarGridSpec(
            num_scalar_prefetch=0,
            grid=(steps,),
            in_specs=[
                pl.BlockSpec((t_r, None, out_lon, C2), lambda i: (i, 0, 0, 0)),
                pl.BlockSpec((t_r, None, out_lon, C2), lambda i: (i, 1, 0, 0)),
                pl.BlockSpec((C2, Cp), lambda i: (0, 0)),
                pl.BlockSpec((C2, Cp), lambda i: (0, 0)),
                pl.BlockSpec((2, Cp), lambda i: (0, 0)),
            ],
            out_specs=out_spec,
        ),
        compiler_params=pltpu.CompilerParams(
            dimension_semantics=("parallel",),
            vmem_limit_bytes=int(vmem_limit),
        ),
        cost_estimate=cost,
    )(x3, x3, w0, w1, csb)

    out = out.reshape(B, out_lat, out_lon, Cp)
    if Cp != Cout:
        out = out[..., :Cout]
    return out


def _reference(x, gamma, beta, w, input_resolution, output_resolution):
    in_lat, in_lon = input_resolution
    out_lat, out_lon = output_resolution
    B = x.shape[0]
    C = x.shape[-1]
    if x.ndim == 3:
        x = x.reshape(B, in_lat, in_lon, C)
    h_pad = out_lat * 2 - in_lat
    w_pad = out_lon * 2 - in_lon
    pt, pb = h_pad // 2, h_pad - h_pad // 2
    plft, prt = w_pad // 2, w_pad - w_pad // 2
    x = jnp.pad(x, ((0, 0), (pt, pb), (plft, prt), (0, 0)))
    x = x.reshape(B, out_lat, 2, out_lon, 2, C).transpose(0, 1, 3, 2, 4, 5)
    x = x.reshape(B, out_lat * out_lon, 4 * C).astype(jnp.float32)
    mean = jnp.mean(x, axis=-1, keepdims=True)
    var = jnp.mean((x - mean) ** 2, axis=-1, keepdims=True)
    y = (x - mean) / jnp.sqrt(var + EPS) * gamma + beta
    y = y @ w.astype(jnp.float32)
    return y.reshape(B, out_lat, out_lon, -1)


if __name__ == "__main__":
    key = jax.random.PRNGKey(0)
    kx, kw, kg, kb, kx2 = jax.random.split(key, 5)

    in_dim = 4
    B = 2

    gamma = 1.0 + 0.1 * jax.random.normal(kg, (4 * in_dim,), dtype=jnp.float32)
    beta = 0.1 * jax.random.normal(kb, (4 * in_dim,), dtype=jnp.float32)
    # torch linear.weight has shape (2C, 4C); we store its transpose (4C, 2C)
    w = (jax.random.normal(kw, (4 * in_dim, 2 * in_dim), dtype=jnp.float32)
         * (1.0 / jnp.sqrt(4.0 * in_dim)))

    # case 1: exact 2x downsample (no spatial padding -> fully fused path)
    in_res, out_res = (16, 16), (8, 8)
    x = jax.random.normal(kx, (B, *in_res, in_dim), dtype=jnp.float32)
    out = jax.block_until_ready(downsample2d(x, gamma, beta, w, in_res, out_res))
    ref = _reference(x, gamma, beta, w, in_res, out_res)
    assert out.shape == (B, out_res[0], out_res[1], 2 * in_dim), out.shape
    err = float(jnp.max(jnp.abs(out - ref.astype(out.dtype))))
    assert err < 1e-4, err

    # case 2: odd input resolution -> exercises the zero-pad path
    in_res, out_res = (15, 14), (8, 8)
    x2 = jax.random.normal(kx2, (B, *in_res, in_dim), dtype=jnp.float32)
    out2 = jax.block_until_ready(downsample2d(x2, gamma, beta, w, in_res, out_res))
    ref2 = _reference(x2, gamma, beta, w, in_res, out_res)
    assert out2.shape == (B, out_res[0], out_res[1], 2 * in_dim), out2.shape
    err2 = float(jnp.max(jnp.abs(out2 - ref2.astype(out2.dtype))))
    assert err2 < 1e-4, err2

    print("KERNEL_OK")
</pallas_src>

<mosaic_0001>
module attributes {stable_mosaic.version = 11 : i64} {
  func.func @_downsample_kernel(%arg0: i32, %arg1: memref<8x1x8x8xf32, #tpu.memory_space<vmem>>, %arg2: memref<8x1x8x8xf32, #tpu.memory_space<vmem>>, %arg3: memref<8x128xf32, #tpu.memory_space<vmem>>, %arg4: memref<8x128xf32, #tpu.memory_space<vmem>>, %arg5: memref<2x128xf32, #tpu.memory_space<vmem>>, %arg6: memref<64x128xf32, #tpu.memory_space<vmem>>) attributes {dimension_semantics = [#tpu.dimension_semantics<parallel>], iteration_bounds = array<i64: 2>, scalar_prefetch = 0 : i64, scratch_operands = 0 : i64, tpu.core_type = #tpu.core_type<tc>, window_params = [{transform_indices = @transform_0, window_bounds = array<i64: 8, 1, 8, 8>}, {transform_indices = @transform_1, window_bounds = array<i64: 8, 1, 8, 8>}, {pipeline_mode = #tpu.pipeline_mode<synchronous>, transform_indices = @transform_2, window_bounds = array<i64: 8, 128>}, {pipeline_mode = #tpu.pipeline_mode<synchronous>, transform_indices = @transform_3, window_bounds = array<i64: 8, 128>}, {pipeline_mode = #tpu.pipeline_mode<synchronous>, transform_indices = @transform_4, window_bounds = array<i64: 2, 128>}, {transform_indices = @transform_5, window_bounds = array<i64: 64, 128>}]} {
    %c0 = arith.constant 0 : index
    %c0_0 = arith.constant 0 : index
    %c0_1 = arith.constant 0 : index
    %c0_2 = arith.constant 0 : index
    %0 = vector.load %arg1[%c0, %c0_0, %c0_1, %c0_2] : memref<8x1x8x8xf32, #tpu.memory_space<vmem>>, vector<8x1x8x8xf32>
    %1 = vector.shape_cast %0 : vector<8x1x8x8xf32> to vector<8x8x8xf32>
    %2 = vector.shape_cast %1 : vector<8x8x8xf32> to vector<64x8xf32>
    %c0_3 = arith.constant 0 : index
    %c0_4 = arith.constant 0 : index
    %c0_5 = arith.constant 0 : index
    %c0_6 = arith.constant 0 : index
    %3 = vector.load %arg2[%c0_3, %c0_4, %c0_5, %c0_6] : memref<8x1x8x8xf32, #tpu.memory_space<vmem>>, vector<8x1x8x8xf32>
    %4 = vector.shape_cast %3 : vector<8x1x8x8xf32> to vector<8x8x8xf32>
    %5 = vector.shape_cast %4 : vector<8x8x8xf32> to vector<64x8xf32>
    %cst = arith.constant dense<0.000000e+00> : vector<64xf32>
    %6 = vector.multi_reduction <add>, %2, %cst [1] : vector<64x8xf32> to vector<64xf32>
    %7 = vector.shape_cast %6 : vector<64xf32> to vector<64x1xf32>
    %cst_7 = arith.constant dense<0.000000e+00> : vector<64xf32>
    %8 = vector.multi_reduction <add>, %5, %cst_7 [1] : vector<64x8xf32> to vector<64xf32>
    %9 = vector.shape_cast %8 : vector<64xf32> to vector<64x1xf32>
    %10 = arith.addf %7, %9 : vector<64x1xf32>
    %11 = arith.mulf %2, %2 : vector<64x8xf32>
    %cst_8 = arith.constant dense<0.000000e+00> : vector<64xf32>
    %12 = vector.multi_reduction <add>, %11, %cst_8 [1] : vector<64x8xf32> to vector<64xf32>
    %13 = vector.shape_cast %12 : vector<64xf32> to vector<64x1xf32>
    %14 = arith.mulf %5, %5 : vector<64x8xf32>
    %cst_9 = arith.constant dense<0.000000e+00> : vector<64xf32>
    %15 = vector.multi_reduction <add>, %14, %cst_9 [1] : vector<64x8xf32> to vector<64xf32>
    %16 = vector.shape_cast %15 : vector<64xf32> to vector<64x1xf32>
    %17 = arith.addf %13, %16 : vector<64x1xf32>
    %cst_10 = arith.constant 6.250000e-02 : f32
    %18 = vector.broadcast %cst_10 : f32 to vector<64x1xf32>
    %19 = arith.mulf %10, %18 : vector<64x1xf32>
    %cst_11 = arith.constant 6.250000e-02 : f32
    %20 = vector.broadcast %cst_11 : f32 to vector<64x1xf32>
    %21 = arith.mulf %17, %20 : vector<64x1xf32>
    %22 = arith.mulf %19, %19 : vector<64x1xf32>
    %23 = arith.subf %21, %22 : vector<64x1xf32>
    %cst_12 = arith.constant 0.000000e+00 : f32
    %24 = vector.broadcast %cst_12 : f32 to vector<64x1xf32>
    %25 = arith.maximumf %23, %24 : vector<64x1xf32>
    %cst_13 = arith.constant 9.99999974E-6 : f32
    %26 = vector.broadcast %cst_13 : f32 to vector<64x1xf32>
    %27 = arith.addf %25, %26 : vector<64x1xf32>
    %28 = math.rsqrt %27 : vector<64x1xf32>
    %c0_14 = arith.constant 0 : index
    %c0_15 = arith.constant 0 : index
    %29 = vector.load %arg3[%c0_14, %c0_15] : memref<8x128xf32, #tpu.memory_space<vmem>>, vector<8x128xf32>
    %cst_16 = arith.constant dense<0.000000e+00> : vector<64x128xf32>
    %30 = tpu.matmul %2, %29, %cst_16 {dimension_numbers = #tpu.dot_dimension_numbers<[1], [0], [0], [1], [0, 0, 1, 1], [], []>} : vector<64x8xf32>, vector<8x128xf32>, vector<64x128xf32> -> vector<64x128xf32>
    %c0_17 = arith.constant 0 : index
    %c0_18 = arith.constant 0 : index
    %31 = vector.load %arg4[%c0_17, %c0_18] : memref<8x128xf32, #tpu.memory_space<vmem>>, vector<8x128xf32>
    %cst_19 = arith.constant dense<0.000000e+00> : vector<64x128xf32>
    %32 = tpu.matmul %5, %31, %cst_19 {dimension_numbers = #tpu.dot_dimension_numbers<[1], [0], [0], [1], [0, 0, 1, 1], [], []>} : vector<64x8xf32>, vector<8x128xf32>, vector<64x128xf32> -> vector<64x128xf32>
    %33 = arith.addf %30, %32 : vector<64x128xf32>
    %c0_20 = arith.constant 0 : index
    %c0_21 = arith.constant 0 : index
    %34 = vector.load %arg5[%c0_20, %c0_21] : memref<2x128xf32, #tpu.memory_space<vmem>>, vector<2x128xf32>
    %35 = vector.extract_strided_slice %34 {offsets = [0, 0], sizes = [1, 128], strides = [1, 1]} : vector<2x128xf32> to vector<1x128xf32>
    %36 = vector.extract_strided_slice %34 {offsets = [1, 0], sizes = [1, 128], strides = [1, 1]} : vector<2x128xf32> to vector<1x128xf32>
    %37 = vector.broadcast %19 : vector<64x1xf32> to vector<64x128xf32>
    %38 = vector.broadcast %35 : vector<1x128xf32> to vector<64x128xf32>
    %39 = arith.mulf %37, %38 : vector<64x128xf32>
    %40 = arith.subf %33, %39 : vector<64x128xf32>
    %41 = vector.broadcast %28 : vector<64x1xf32> to vector<64x128xf32>
    %42 = arith.mulf %40, %41 : vector<64x128xf32>
    %43 = vector.broadcast %36 : vector<1x128xf32> to vector<64x128xf32>
    %44 = arith.addf %42, %43 : vector<64x128xf32>
    %c0_22 = arith.constant 0 : index
    %c0_23 = arith.constant 0 : index
    %45 = vector.load %arg6[%c0_22, %c0_23] : memref<64x128xf32, #tpu.memory_space<vmem>>, vector<64x128xf32>
    tpu.vector_store %arg6[%c0_22, %c0_23], %44 {strides = array<i32>} : memref<64x128xf32, #tpu.memory_space<vmem>>, vector<64x128xf32>,
    return
  }
  func.func @transform_0(%arg0: i32) -> (i32, i32, i32, i32) {
    %c0_i32 = arith.constant 0 : i32
    %c0_i32_0 = arith.constant 0 : i32
    %c0_i32_1 = arith.constant 0 : i32
    %c0_i32_2 = arith.constant 0 : i32
    return %arg0, %c0_i32, %c0_i32_0, %c0_i32_1 : i32, i32, i32, i32
  }
  func.func @transform_1(%arg0: i32) -> (i32, i32, i32, i32) {
    %c1_i32 = arith.constant 1 : i32
    %c0_i32 = arith.constant 0 : i32
    %c0_i32_0 = arith.constant 0 : i32
    %c0_i32_1 = arith.constant 0 : i32
    return %arg0, %c1_i32, %c0_i32, %c0_i32_0 : i32, i32, i32, i32
  }
  func.func @transform_2(%arg0: i32) -> (i32, i32) {
    %c0_i32 = arith.constant 0 : i32
    %c0_i32_0 = arith.constant 0 : i32
    %c0_i32_1 = arith.constant 0 : i32
    return %c0_i32, %c0_i32_0 : i32, i32
  }
  func.func @transform_3(%arg0: i32) -> (i32, i32) {
    %c0_i32 = arith.constant 0 : i32
    %c0_i32_0 = arith.constant 0 : i32
    %c0_i32_1 = arith.constant 0 : i32
    return %c0_i32, %c0_i32_0 : i32, i32
  }
  func.func @transform_4(%arg0: i32) -> (i32, i32) {
    %c0_i32 = arith.constant 0 : i32
    %c0_i32_0 = arith.constant 0 : i32
    %c0_i32_1 = arith.constant 0 : i32
    return %c0_i32, %c0_i32_0 : i32, i32
  }
  func.func @transform_5(%arg0: i32) -> (i32, i32) {
    %c0_i32 = arith.constant 0 : i32
    %c0_i32_0 = arith.constant 0 : i32
    return %arg0, %c0_i32 : i32, i32
  }
}

</mosaic_0001>

<bundles_post_ra>
// kernel: tpu_custom_call.1
= control target key start
LH: loop header
LB: loop body
LE: loop exit
PB: predicated region body
PF: predicated region fallthrough
CT: control target
= control target key end

     0   :  { %10 = vsyncpa [#allocation5], 0  ;;  %s1565_s0 = inlined_call_operand.vmem [shape: f32[16,2,8,8], index: 0, kind: input, shape index: {}]   ;;  %s1566_s1 = inlined_call_operand.vmem [shape: f32[16,2,8,8], index: 1, kind: input, shape index: {}]   ;;  %s1567_s2 = inlined_call_operand.vmem [shape: f32[8,128], index: 2, kind: input, shape index: {}]   ;;  %s1568_s3 = inlined_call_operand.vmem [shape: f32[8,128], index: 3, kind: input, shape index: {}]   ;;  %s1569_s4 = inlined_call_operand.vmem [shape: f32[2,128], index: 4, kind: input, shape index: {}]   ;;  %s1570_s5 = inlined_call_operand.hbm [shape: f32[128,128], index: 5, kind: output, shape index: {}]  }
   0x1   :  { %12 = vsyncpa [#allocation5 + $0x1], 0  ;;  %s1234_s18 = smov 0   ;;  %s1236_s19 = smov 0  }
   0x2   :  { %s1238_s20 = smov 0   ;;  %s1240_s21 = smov 0  }
   0x3 LB: > { %s988_s22 = sadd.s32 4294967295, %s1199_s21   ;;  %s989_s23 = sadd.s32 4294967294, %s1199_s21   ;;  %s1199_s21 = sphi %s1240_s21, %s1577_s21   ;;  %s1195_s20 = sphi %s1238_s20, %s1576_s20   ;;  %s1191_s19 = sphi %s1236_s19, %s1575_s19   ;;  %s1187_s18 = sphi %s1234_s18, %s1574_s18  }
   0x4   : > { %s1257_s24 = sadd.s32 1, %s1199_s21   ;;  %s25_s25 = sadd.s32 1, %s1195_s20 }
   0x5   : > { %s22_s26 = ssub.s32 %s1199_s21, %s1257_s24  ;;  %p32_p0 = scmp.ne.s32.totalorder %s1195_s20, %s1191_s19 }
   0x6   : > { %p23_p1 = scmp.eq.s32.totalorder %s22_s26, 0  ;;  %p33_p2 = scmp.eq.s32.totalorder %s1199_s21, 0 }
   0x7   : > { %p151_p3 = scmp.eq.s32.totalorder %s988_s22, 1  ;;  %p156_p4 = scmp.ne.s32.totalorder %s1191_s19, %s1187_s18 }
   0x8   : > { %s1270_s27 = scalar_select %p23_p1, %s1195_s20, %s25_s25  }
   0x9   : > { %p1272_p5 = por %p33_p2, %p32_p0  ;;  %p1276_p6 = por %p151_p3, %p32_p0 }
   0xa   : > { %p157_p7 = scmp.eq.s32.totalorder %s989_s23, 1  ;;  %p991_p9 = scmp.ge.s32.totalorder %s1199_s21, 2 }
   0xc   : > { %p1280_p8 = por %p157_p7, %p156_p4  ;;  %182 = sbr.rel (%p991_p9) target bundleno = 33 (0x21), region = 28 }
  0x11   : > { %185 = sbr.rel (!%p1272_p5) target bundleno = 25 (0x19), region = 32  ;;  %s187_s6 = sand.u32 (%p1272_p5), 1, %s1195_s20  }
  0x12   : > { %s1033_s7 = sshll.u32 (%p1272_p5), %s1199_s21, 7  ;;  %s992_s8 = sshll.u32 (%p1272_p5), %s187_s6, 6 }
  0x13   : > { %s193_s11 = scalar_lea.vmem (%p1272_p5), %s1565_s0, %s1033_s7  ;;  %s189_s12 = scalar_lea.vmem (%p1272_p5), [#allocation2], %s992_s8 }
  0x14   : > { %v236_v0 = vld [vmem:[%s193_s11] sm:$0xff] (%p1272_p5)  ;;  %v238_v1 = vld [vmem:[%s193_s11 + $0x10] sm:$0xff] (%p1272_p5) }
  0x15   : > { %v240_v2 = vld [vmem:[%s193_s11 + $0x20] sm:$0xff] (%p1272_p5)  ;;  %237 = vst [vmem:[%s189_s12] sm:$0xff] (%p1272_p5), %v236_v0  ;;  %239 = vst [vmem:[%s189_s12 + $0x8] sm:$0xff] (%p1272_p5), %v238_v1  ;;  %v242_v3 = vld [vmem:[%s193_s11 + $0x30] sm:$0xff] (%p1272_p5) }
  0x16   : > { %241 = vst [vmem:[%s189_s12 + $0x10] sm:$0xff] %v240_v2  ;;  %v244_v4 = vld [vmem:[%s193_s11 + $0x40] sm:$0xff]  ;;  %v246_v5 = vld [vmem:[%s193_s11 + $0x50] sm:$0xff]  ;;  %243 = vst [vmem:[%s189_s12 + $0x18] sm:$0xff] %v242_v3 }
  0x17   : > { %245 = vst [vmem:[%s189_s12 + $0x20] sm:$0xff] %v244_v4  ;;  %247 = vst [vmem:[%s189_s12 + $0x28] sm:$0xff] %v246_v5  ;;  %v248_v6 = vld [vmem:[%s193_s11 + $0x60] sm:$0xff]  ;;  %v250_v7 = vld [vmem:[%s193_s11 + $0x70] sm:$0xff] }
  0x18   : > { %249 = vst [vmem:[%s189_s12 + $0x30] sm:$0xff] %v248_v6  ;;  %251 = vst [vmem:[%s189_s12 + $0x38] sm:$0xff] %v250_v7 }
  0x19 PF: > { %257 = sbr.rel (!%p1272_p5) target bundleno = 33 (0x21), region = 70  ;;  %s259_s13 = sand.u32 (%p1272_p5), 1, %s1195_s20  }
  0x1a   : > { %s1034_s14 = sshll.u32 (%p1272_p5), %s1199_s21, 7  ;;  %s996_s15 = sshll.u32 (%p1272_p5), %s259_s13, 6 }
  0x1b   : > { %s933_s23 = scalar_lea.vmem (%p1272_p5), %s1566_s1, %s1034_s14  ;;  %s261_s25 = scalar_lea.vmem (%p1272_p5), [#allocation3], %s996_s15 }
  0x1c   : > { %v999_v8 = vld [vmem:[%s933_s23 + $0x8] sm:$0xff] (%p1272_p5)  ;;  %v1000_v9 = vld [vmem:[%s933_s23 + $0x18] sm:$0xff] (%p1272_p5) }
  0x1d   : > { %v1001_v10 = vld [vmem:[%s933_s23 + $0x28] sm:$0xff] (%p1272_p5)  ;;  %310 = vst [vmem:[%s261_s25] sm:$0xff] (%p1272_p5), %v999_v8  ;;  %312 = vst [vmem:[%s261_s25 + $0x8] sm:$0xff] (%p1272_p5), %v1000_v9  ;;  %v1002_v11 = vld [vmem:[%s933_s23 + $0x38] sm:$0xff] (%p1272_p5) }
  0x1e   : > { %314 = vst [vmem:[%s261_s25 + $0x10] sm:$0xff] %v1001_v10  ;;  %v1003_v12 = vld [vmem:[%s933_s23 + $0x48] sm:$0xff]  ;;  %v1004_v13 = vld [vmem:[%s933_s23 + $0x58] sm:$0xff]  ;;  %316 = vst [vmem:[%s261_s25 + $0x18] sm:$0xff] %v1002_v11 }
  0x1f   : > { %318 = vst [vmem:[%s261_s25 + $0x20] sm:$0xff] %v1003_v12  ;;  %320 = vst [vmem:[%s261_s25 + $0x28] sm:$0xff] %v1004_v13  ;;  %v1005_v14 = vld [vmem:[%s933_s23 + $0x68] sm:$0xff]  ;;  %v1006_v15 = vld [vmem:[%s933_s23 + $0x78] sm:$0xff] }
  0x20   : > { %322 = vst [vmem:[%s261_s25 + $0x30] sm:$0xff] %v1005_v14  ;;  %324 = vst [vmem:[%s261_s25 + $0x38] sm:$0xff] %v1006_v15 }
  0x21 PF: > { %p1007_p10 = scmp.ge.s32.totalorder %s1199_s21, 1  ;;  %p329_p11 = scmp.lt.s32.totalorder %s1199_s21, 3 }
  0x23   : > { %p330_p12 = pnand %p1007_p10, %p329_p11 }
  0x24   : > { %s336_s8 = sand.u32 (!%p330_p12), 1, %s1191_s19   ;;  %s1035_s15 = sshll.u32 (!%p330_p12), %s988_s22, 10 }
  0x25   : > { %333 = sbr.rel (%p330_p12) target bundleno = 288 (0x120), region = 108  ;;  %s1312_s9 = sshll.u32 (!%p330_p12), %s336_s8, 6 }
  0x26   : > { %s1315_s10 = scalar_lea.vmem (!%p330_p12), [#allocation3], %s1312_s9  ;;  %s1329_s11 = scalar_lea.vmem (!%p330_p12), [#allocation2], %s1312_s9 }
  0x27   : > { %s1496_s14 = scalar_lea.vmem (!%p330_p12), [#allocation4], %s1312_s9  ;;  %s1516_s25 = scalar_lea.hbm (!%p330_p12), %s1570_s5, %s1035_s15 }
  0x28   : > { %s901_s16 = sshll.u32 (!%p330_p12), %s1496_s14, 4  ;;  %s1524_s22 = scalar_lea.sflag (!%p330_p12), [#allocation5], %s336_s8  ;;  %s1518_s16 = int_to_ptr.vmem [resolvable:$true] %s901_s16 }
  0x29   : > { %s1139_s26 = scalar_lea.vmem (!%p330_p12), %s1518_s16, 1024  ;;  %s1201_s28 = smov (!%p330_p12), [#allocation4]  }
  0x2a   : > { %v579_v16 = vld [vmem:[%s1568_s3] sm:$0xff]  ;;  %vm393_vm0 = vcmask 64512   ;;  %v1321_v19 = vld [vmem:[%s1315_s10 + $0x8] sm:$0xff]  ;;  %v1324_v20 = vld [vmem:[%s1315_s10 + $0x10] sm:$0xff]  ;;  %p1140_p13 = scmp.ne.s32.totalorder %s1518_s16, %s1139_s26  ;;  %s1143_s6 = sshll.u32 %s1201_s28, 4  ;;  %s1144_s6 = int_to_ptr.vmem [resolvable:$false] %s1143_s6 }
  0x2b   : > { %v578_v17 = vld [vmem:[%s1567_s2] sm:$0xff]  ;;  %1054 = vmatprep.subr.mxu0 %v579_v16  ;;  %v1333_v22 = vld [vmem:[%s1329_s11 + $0x10] sm:$0xff]  ;;  %v378_v23 = vld [vmem:[%s1329_s11 + $0x8] sm:$0xff]  ;;  %v421_v42 = vsel %vm393_vm0, %v1321_v19, 0.0  ;;  %v424_v45 = vsel %vm393_vm0, %v1324_v20, 0.0  ;;  %v483_v1 = vmul.f32 %v1321_v19, %v1321_v19  ;;  %v484_v7 = vmul.f32 %v1324_v20, %v1324_v20  ;;  %s1145_s7 = scalar_lea.vmem %s1144_s6, 2048  ;;  %p1146_p2 = scmp.lt.s32.totalorder %s1518_s16, %s1144_s6 }
  0x2c   : > { %1068 = vmatprep.subr.mxu1 %v578_v17  ;;  %1055 = vmatpush3.msra.mxu0 %v579_v16  ;;  %v1318_v18 = vld [vmem:[%s1315_s10] sm:$0xff]  ;;  %v400_v24 = vsel %vm393_vm0, %v1333_v22, 0.0  ;;  %v380_v26 = vld [vmem:[%s1329_s11 + $0x18] sm:$0xff]  ;;  %v397_v29 = vsel %vm393_vm0, %v378_v23, 0.0  ;;  %v382_v31 = vld [vmem:[%s1329_s11 + $0x28] sm:$0xff]  ;;  %v451_v49 = vmul.f32 %v378_v23, %v378_v23  ;;  %v452_v55 = vmul.f32 %v1333_v22, %v1333_v22  ;;  %p1141_p0 = pnand %p1140_p13, %p1276_p6  ;;  %p1147_p3 = scmp.lt.s32.totalorder %s1145_s7, %s1139_s26 }
  0x2d   : > { %1069 = vmatpush3.msra.mxu1 %v578_v17  ;;  %1056 = vmatprep.mubr.msk.f32.mxu0 %vm393_vm0, %v1318_v18  ;;  %v377_v21 = vld [vmem:[%s1329_s11] sm:$0xff]  ;;  %v1345_v27 = vld [vmem:[%s1315_s10 + $0x18] sm:$0xff]  ;;  %v403_v28 = vsel %vm393_vm0, %v380_v26, 0.0  ;;  %v1362_v33 = vld [vmem:[%s1315_s10 + $0x28] sm:$0xff]  ;;  %v409_v34 = vsel %vm393_vm0, %v382_v31, 0.0  ;;  %v418_v43 = vsel %vm393_vm0, %v1318_v18, 0.0  ;;  %v453_v53 = vmul.f32 %v380_v26, %v380_v26 }
  0x2e   : > { %1070 = vmatprep.mubr.msk.f32.mxu1 %vm393_vm0, %v377_v21  ;;  %1057 = vmatmul.mubr.msk.f32.vlgmr.msra.gmra.mxu0 %vm393_vm0, %v1321_v19  ;;  %v394_v25 = vsel %vm393_vm0, %v377_v21, 0.0  ;;  %v1354_v30 = vld [vmem:[%s1315_s10 + $0x20] sm:$0xff]  ;;  %v1370_v36 = vld [vmem:[%s1315_s10 + $0x30] sm:$0xff]  ;;  %v384_v37 = vld [vmem:[%s1329_s11 + $0x38] sm:$0xff]  ;;  %v427_v44 = vsel %vm393_vm0, %v1345_v27, 0.0  ;;  %v433_v46 = vsel %vm393_vm0, %v1362_v33, 0.0  ;;  %v450_v51 = vmul.f32 %v377_v21, %v377_v21  ;;  %p1142_p1 = pneg %p1141_p0  ;;  %p1148_p4 = por %p1147_p3, %p1146_p2 }
  0x2f   : > { %401 = vadd.xlane.f32.xlu1 %v400_v24  ;;  %1071 = vmatmul.mubr.msk.f32.vlgmr.msra.gmra.mxu1 %vm393_vm0, %v378_v23  ;;  %v381_v32 = vld [vmem:[%s1329_s11 + $0x20] sm:$0xff]  ;;  %v383_v38 = vld [vmem:[%s1329_s11 + $0x30] sm:$0xff]  ;;  %v1378_v39 = vld [vmem:[%s1315_s10 + $0x38] sm:$0xff]  ;;  %v415_v40 = vsel %vm393_vm0, %v384_v37, 0.0  ;;  %v430_v47 = vsel %vm393_vm0, %v1354_v30, 0.0  ;;  %v436_v50 = vsel %vm393_vm0, %v1370_v36, 0.0  ;;  %v455_v57 = vmul.f32 %v382_v31, %v382_v31 }
  0x30   : > { %395 = vadd.xlane.f32.xlu0 %v394_v25  ;;  %1059 = vmatprep.mubr.msk.f32.mxu0 %vm393_vm0, %v1324_v20  ;;  %v406_v35 = vsel %vm393_vm0, %v381_v32, 0.0  ;;  %v412_v41 = vsel %vm393_vm0, %v383_v38, 0.0  ;;  %v439_v48 = vsel %vm393_vm0, %v1378_v39, 0.0  ;;  %v461_v52 = vsel %vm393_vm0, %v451_v49, 0.0  ;;  %p1149_p5 = pnand %p1148_p4, %p1142_p1 }
  0x31   : > { %1073 = vmatprep.mubr.msk.f32.mxu1 %vm393_vm0, %v1333_v22  ;;  %v458_v54 = vsel %vm393_vm0, %v450_v51, 0.0  ;;  %v467_v56 = vsel %vm393_vm0, %v453_v53, 0.0  ;;  %v464_v58 = vsel %vm393_vm0, %v452_v55, 0.0  ;;  %v454_v59 = vmul.f32 %v381_v32, %v381_v32 }
  0x32   : > { %1060 = vmatmul.mubr.msk.f32.gmra.mxu0 %vm393_vm0, %v1345_v27  ;;  %v473_v60 = vsel %vm393_vm0, %v455_v57, 0.0  ;;  %v457_v61 = vmul.f32 %v384_v37, %v384_v37  ;;  %v456_v63 = vmul.f32 %v383_v38, %v383_v38  ;;  %v482_v3 = vmul.f32 %v1318_v18, %v1318_v18 }
  0x33   : > { %404 = vadd.xlane.f32.xlu1 %v403_v28  ;;  %1074 = vmatmul.mubr.msk.f32.gmra.mxu1 %vm393_vm0, %v380_v26  ;;  %v470_v62 = vsel %vm393_vm0, %v454_v59, 0.0  ;;  %v493_v4 = vsel %vm393_vm0, %v483_v1, 0.0  ;;  %v485_v5 = vmul.f32 %v1345_v27, %v1345_v27  ;;  %v487_v9 = vmul.f32 %v1362_v33, %v1362_v33 }
  0x34   : > { %398 = vadd.xlane.f32.xlu0 %v397_v29  ;;  %1062 = vmatprep.mubr.msk.f32.mxu0 %vm393_vm0, %v1354_v30  ;;  %v479_v0 = vsel %vm393_vm0, %v457_v61, 0.0  ;;  %v476_v2 = vsel %vm393_vm0, %v456_v63, 0.0  ;;  %v490_v6 = vsel %vm393_vm0, %v482_v3, 0.0  ;;  %v496_v10 = vsel %vm393_vm0, %v484_v7, 0.0 }
  0x35   : > { %1076 = vmatprep.mubr.msk.f32.mxu1 %vm393_vm0, %v381_v32  ;;  %v499_v8 = vsel %vm393_vm0, %v485_v5, 0.0  ;;  %v486_v11 = vmul.f32 %v1354_v30, %v1354_v30  ;;  %v505_v12 = vsel %vm393_vm0, %v487_v9, 0.0  ;;  %v489_v13 = vmul.f32 %v1378_v39, %v1378_v39 }
  0x36   : > { %1063 = vmatmul.mubr.msk.f32.gmra.mxu0 %vm393_vm0, %v1362_v33  ;;  %v488_v15 = vmul.f32 %v1370_v36, %v1370_v36 }
  0x37   : > { %410 = vadd.xlane.f32.xlu1 %v409_v34  ;;  %1077 = vmatmul.mubr.msk.f32.gmra.mxu1 %vm393_vm0, %v382_v31  ;;  %v502_v14 = vsel %vm393_vm0, %v486_v11, 0.0  ;;  %v511_v16 = vsel %vm393_vm0, %v489_v13, 0.0 }
  0x38   : > { %407 = vadd.xlane.f32.xlu0 %v406_v35  ;;  %1065 = vmatprep.mubr.msk.f32.mxu0 %vm393_vm0, %v1370_v36  ;;  %v508_v17 = vsel %vm393_vm0, %v488_v15, 0.0 }
  0x39   : > { %1079 = vmatprep.mubr.msk.f32.mxu1 %vm393_vm0, %v383_v38 }
  0x3a   : > { %1066 = vmatmul.mubr.msk.f32.gmra.mxu0 %vm393_vm0, %v1378_v39 }
  0x3b   : > { %416 = vadd.xlane.f32.xlu1 %v415_v40  ;;  %1080 = vmatmul.mubr.msk.f32.gmra.mxu1 %vm393_vm0, %v384_v37 }
  0x3c   : > { %413 = vadd.xlane.f32.xlu0 %v412_v41 }
  0x3f   : > { %422 = vadd.xlane.f32.xlu1 %v421_v42 }
  0x40   : > { %419 = vadd.xlane.f32.xlu0 %v418_v43 }
  0x43   : > { %428 = vadd.xlane.f32.xlu1 %v427_v44 }
  0x44   : > { %425 = vadd.xlane.f32.xlu0 %v424_v45 }
  0x47   : > { %434 = vadd.xlane.f32.xlu1 %v433_v46 }
  0x48   : > { %431 = vadd.xlane.f32.xlu0 %v430_v47 }
  0x4b   : > { %440 = vadd.xlane.f32.xlu1 %v439_v48 }
  0x4c   : > { %437 = vadd.xlane.f32.xlu0 %v436_v50 }
  0x4f   : > { %462 = vadd.xlane.f32.xlu1 %v461_v52  ;;  %v839_v52 = vlaneseq }
  0x50   : > { %459 = vadd.xlane.f32.xlu0 %v458_v54 }
  0x53   : > { %468 = vadd.xlane.f32.xlu1 %v467_v56 }
  0x54   : > { %465 = vadd.xlane.f32.xlu0 %v464_v58 }
  0x57   : > { %474 = vadd.xlane.f32.xlu1 %v473_v60 }
  0x58   : > { %471 = vadd.xlane.f32.xlu0 %v470_v62 }
  0x5b   : > { %480 = vadd.xlane.f32.xlu1 %v479_v0 }
  0x5c   : > { %477 = vadd.xlane.f32.xlu0 %v476_v2  ;;  %v1456_v2 = vshrl.u32 %v839_v52, 7 }
  0x5f   : > { %494 = vadd.xlane.f32.xlu1 %v493_v4 }
  0x60   : > { %491 = vadd.xlane.f32.xlu0 %v490_v6 }
  0x63   : > { %500 = vadd.xlane.f32.xlu1 %v499_v8 }
  0x64   : > { %497 = vadd.xlane.f32.xlu0 %v496_v10 }
  0x67   : > { %506 = vadd.xlane.f32.xlu1 %v505_v12 }
  0x68   : > { %503 = vadd.xlane.f32.xlu0 %v502_v14 }
  0x6b   : > { %512 = vadd.xlane.f32.xlu1 %v511_v16 }
  0x6c   : > { %509 = vadd.xlane.f32.xlu0 %v508_v17 }
  0xb8   : > { %v402_v18 = vpop.xlane.xlu1 %401 }
  0xb9   : > { %v396_v19 = vpop.xlane.xlu0 %395 }
  0xbc   : > { %v405_v20 = vpop.xlane.xlu1 %404 }
  0xbd   : > { %v399_v21 = vpop.xlane.xlu0 %398 }
  0xc0   : > { %v411_v22 = vpop.xlane.xlu1 %410 }
  0xc1   : > { %v408_v23 = vpop.xlane.xlu0 %407 }
  0xc4   : > { %v417_v24 = vpop.xlane.xlu1 %416 }
  0xc5   : > { %v414_v25 = vpop.xlane.xlu0 %413 }
  0xc8   : > { %v423_v26 = vpop.xlane.xlu1 %422 }
  0xc9   : > { %v420_v27 = vpop.xlane.xlu0 %419  ;;  %v443_v40 = vadd.f32 %v423_v26, %v399_v21 }
  0xca   : > { %v442_v41 = vadd.f32 %v420_v27, %v396_v19 }
  0xcb   : > { %v1442_v44 = vmul.f32 0.0625, %v443_v40 }
  0xcc   : > { %v429_v28 = vpop.xlane.xlu1 %428  ;;  %v1444_v46 = vmul.f32 0.0625, %v442_v41 }
  0xcd   : > { %v426_v29 = vpop.xlane.xlu0 %425  ;;  %v445_v45 = vadd.f32 %v429_v28, %v405_v20  ;;  %v539_v55 = vmul.f32 %v1442_v44, %v1442_v44 }
  0xce   : > { %v444_v47 = vadd.f32 %v426_v29, %v402_v18  ;;  %v538_v58 = vmul.f32 %v1444_v46, %v1444_v46 }
  0xcf   : > { %v1448_v56 = vmul.f32 0.0625, %v445_v45 }
  0xd0   : > { %v435_v30 = vpop.xlane.xlu1 %434  ;;  %v1452_v59 = vmul.f32 0.0625, %v444_v47 }
  0xd1   : > { %v432_v31 = vpop.xlane.xlu0 %431  ;;  %v447_v49 = vadd.f32 %v435_v30, %v411_v22  ;;  %v541_v7 = vmul.f32 %v1448_v56, %v1448_v56 }
  0xd2   : > { %v446_v53 = vadd.f32 %v432_v31, %v408_v23  ;;  %v540_v12 = vmul.f32 %v1452_v59, %v1452_v59 }
  0xd3   : > { %v1454_v62 = vmul.f32 0.0625, %v447_v49 }
  0xd4   : > { %v441_v32 = vpop.xlane.xlu1 %440  ;;  %v1458_v3 = vmul.f32 0.0625, %v446_v53 }
  0xd5   : > { %v438_v33 = vpop.xlane.xlu0 %437  ;;  %v449_v8 = vadd.f32 %v441_v32, %v417_v24  ;;  %v543_v18 = vmul.f32 %v1454_v62, %v1454_v62 }
  0xd6   : > { %v448_v13 = vadd.f32 %v438_v33, %v414_v25  ;;  %v542_v24 = vmul.f32 %v1458_v3, %v1458_v3 }
  0xd7   : > { %v1468_v25 = vmul.f32 0.0625, %v449_v8 }
  0xd8   : > { %v463_v34 = vpop.xlane.xlu1 %462  ;;  %v1470_v33 = vmul.f32 0.0625, %v448_v13 }
  0xd9   : > { %v460_v35 = vpop.xlane.xlu0 %459  ;;  %v545_v52 = vmul.f32 %v1468_v25, %v1468_v25 }
  0xdc   : > { %v469_v36 = vpop.xlane.xlu1 %468 }
  0xdd   : > { %v466_v37 = vpop.xlane.xlu0 %465 }
  0xe0   : > { %v475_v38 = vpop.xlane.xlu1 %474 }
  0xe1   : > { %v472_v39 = vpop.xlane.xlu0 %471 }
  0xe4   : > { %v1438_v42 = vpop.xlane.xlu1 %480 }
  0xe5   : > { %v1440_v43 = vpop.xlane.xlu0 %477 }
  0xe8   : > { %v495_v48 = vpop.xlane.xlu1 %494 }
  0xe9   : > { %v515_v50 = vadd.f32 %v495_v48, %v463_v34  ;;  %v492_v51 = vpop.xlane.xlu0 %491  ;;  %v838_v48 = vld [vmem:[%s1569_s4] sm:$0x3] }
  0xea   : > { %v514_v54 = vadd.f32 %v492_v51, %v460_v35 }
  0xeb   : > { %v531_v57 = vmul.f32 0.0625, %v515_v50 }
  0xec   : > { %v530_v60 = vmul.f32 0.0625, %v514_v54  ;;  %v501_v61 = vpop.xlane.xlu1 %500 }
  0xed   : > { %v547_v63 = vsub.f32 %v531_v57, %v539_v55  ;;  %v517_v0 = vadd.f32 %v501_v61, %v469_v36  ;;  %v498_v1 = vpop.xlane.xlu0 %497  ;;  %v544_v55 = vmul.f32 %v1470_v33, %v1470_v33 }
  0xee   : > { %v546_v4 = vsub.f32 %v530_v60, %v538_v58  ;;  %v516_v5 = vadd.f32 %v498_v1, %v466_v37  ;;  %v1058_v6 = vpop.f32.mrf.mxu0 }
  0xef   : > { %v555_v9 = vmax.f32 %v547_v63, 0.0  ;;  %v533_v10 = vmul.f32 0.0625, %v517_v0  ;;  %v1072_v11 = vpop.f32.mrf.mxu1 }
  0xf0   : > { %v554_v14 = vmax.f32 %v546_v4, 0.0  ;;  %v532_v15 = vmul.f32 0.0625, %v516_v5  ;;  %v507_v16 = vpop.xlane.xlu1 %506  ;;  %v670_v17 = vpop.f32.mrf.mxu0  ;;  %v869_v4 = vsub.s32 1, %v1456_v2  ;;  %v805_v5 = vadd.f32 %v1072_v11, %v1058_v6 }
  0xf1   : > { %v563_v19 = vadd.f32 1e-05, %v555_v9  ;;  %v549_v20 = vsub.f32 %v533_v10, %v541_v7  ;;  %v519_v21 = vadd.f32 %v507_v16, %v475_v38  ;;  %v504_v22 = vpop.xlane.xlu0 %503  ;;  %v799_v23 = vpop.f32.mrf.mxu1  ;;  %v841_v38 = vsub.s32 0, %v1456_v2 }
  0xf2   : > { %v562_v26 = vadd.f32 1e-05, %v554_v14  ;;  %v548_v27 = vsub.f32 %v532_v15, %v540_v12  ;;  %v518_v28 = vadd.f32 %v504_v22, %v472_v39  ;;  %v1061_v29 = vpop.f32.mrf.mxu0  ;;  %v800_v8 = vadd.f32 %v799_v23, %v670_v17 }
  0xf3   : > { %1123 = vrsqrt.f32 %v563_v19  ;;  %v557_v30 = vmax.f32 %v549_v20, 0.0  ;;  %v535_v31 = vmul.f32 0.0625, %v519_v21  ;;  %v1075_v32 = vpop.f32.mrf.mxu1  ;;  %v1482_v58 = vrot.slane %v838_v48, %v841_v38 }
  0xf4   : > { %1125 = vrsqrt.f32 %v562_v26  ;;  %v556_v34 = vmax.f32 %v548_v27, 0.0  ;;  %v534_v35 = vmul.f32 0.0625, %v518_v28  ;;  %v513_v36 = vpop.xlane.xlu1 %512  ;;  %v680_v37 = vpop.f32.mrf.mxu0  ;;  %v815_v20 = vadd.f32 %v1075_v32, %v1061_v29 }
  0xf5   : > { %v565_v40 = vadd.f32 1e-05, %v557_v30  ;;  %v551_v41 = vsub.f32 %v535_v31, %v543_v18  ;;  %v521_v39 = vadd.f32 %v513_v36, %v1438_v42  ;;  %v510_v45 = vpop.xlane.xlu0 %509  ;;  %v809_v47 = vpop.f32.mrf.mxu1  ;;  %v844_v10 = vmul.f32 %v1482_v58, %v1442_v44 }
  0xf6   : > { %v564_v49 = vadd.f32 1e-05, %v556_v34  ;;  %v550_v50 = vsub.f32 %v534_v35, %v542_v24  ;;  %v520_v51 = vadd.f32 %v510_v45, %v1440_v43  ;;  %v1064_v63 = vpop.f32.mrf.mxu0  ;;  %v843_v15 = vmul.f32 %v1482_v58, %v1444_v46 }
  0xf7   : > { %1127 = vrsqrt.f32 %v565_v40  ;;  %v559_v53 = vmax.f32 %v551_v41, 0.0  ;;  %v537_v54 = vmul.f32 0.0625, %v521_v39  ;;  %v1078_v0 = vpop.f32.mrf.mxu1  ;;  %v870_v18 = vrot.slane %v838_v48, %v869_v4 }
  0xf8   : > { %1129 = vrsqrt.f32 %v564_v49  ;;  %v558_v42 = vmax.f32 %v550_v50, 0.0  ;;  %v536_v57 = vmul.f32 0.0625, %v520_v51  ;;  %v690_v13 = vpop.f32.mrf.mxu0  ;;  %v852_v19 = vsub.f32 %v805_v5, %v844_v10 }
  0xf9   : > { %v567_v60 = vadd.f32 1e-05, %v559_v53  ;;  %v553_v61 = vsub.f32 %v537_v54, %v545_v52  ;;  %v819_v14 = vpop.f32.mrf.mxu1  ;;  %v851_v6 = vsub.f32 %v800_v8, %v843_v15  ;;  %v810_v11 = vadd.f32 %v809_v47, %v680_v37 }
  0xfa   : > { %v566_v1 = vadd.f32 1e-05, %v558_v42  ;;  %v552_v43 = vsub.f32 %v536_v57, %v544_v55  ;;  %v846_v44 = vmul.f32 %v1482_v58, %v1448_v56  ;;  %v1067_v22 = vpop.f32.mrf.mxu0  ;;  %v845_v46 = vmul.f32 %v1482_v58, %v1452_v59 }
  0xfb   : > { %1131 = vrsqrt.f32 %v567_v60  ;;  %v561_v7 = vmax.f32 %v553_v61, 0.0  ;;  %v1081_v23 = vpop.f32.mrf.mxu1  ;;  %v825_v28 = vadd.f32 %v1078_v0, %v1064_v63  ;;  %v820_v32 = vadd.f32 %v819_v14, %v690_v13 }
  0xfc   : > { %1133 = vrsqrt.f32 %v566_v1  ;;  %v560_v9 = vmax.f32 %v552_v43, 0.0  ;;  %v854_v27 = vsub.f32 %v815_v20, %v846_v44  ;;  %v853_v31 = vsub.f32 %v810_v11, %v845_v46  ;;  %v700_v59 = vpop.f32.mrf.mxu0 }
  0xfd   : > { %v569_v12 = vadd.f32 1e-05, %v561_v7  ;;  %v848_v35 = vmul.f32 %v1482_v58, %v1454_v62  ;;  %v829_v36 = vpop.f32.mrf.mxu1  ;;  %v847_v37 = vmul.f32 %v1482_v58, %v1458_v3  ;;  %v835_v39 = vadd.f32 %v1081_v23, %v1067_v22 }
  0xfe   : > { %v568_v16 = vadd.f32 1e-05, %v560_v9  ;;  %v830_v48 = vadd.f32 %v829_v36, %v700_v59  ;;  %v850_v50 = vmul.f32 %v1482_v58, %v1468_v25  ;;  %v849_v3 = vmul.f32 %v1482_v58, %v1470_v33 }
  0xff   : > { %1135 = vrsqrt.f32 %v569_v12  ;;  %v856_v41 = vsub.f32 %v825_v28, %v848_v35  ;;  %v855_v47 = vsub.f32 %v820_v32, %v847_v37 }
 0x100   : > { %v1124_v2 = vpop.eup %1123  ;;  %1137 = vrsqrt.f32 %v568_v16  ;;  %v858_v54 = vsub.f32 %v835_v39, %v850_v50  ;;  %v857_v57 = vsub.f32 %v830_v48, %v849_v3 }
 0x101   : > { %v1126_v17 = vpop.eup %1125  ;;  %v860_v21 = vmul.f32 %v1124_v2, %v852_v19 }
 0x102   : > { %v859_v24 = vmul.f32 %v1126_v17, %v851_v6 }
 0x103   : > { %v872_v26 = vadd.f32 %v870_v18, %v860_v21 }
 0x104   : > { %v1128_v29 = vpop.eup %1127  ;;  %v871_v30 = vadd.f32 %v870_v18, %v859_v24 }
 0x105   : > { %v1130_v34 = vpop.eup %1129  ;;  %880 = vst [vmem:[%s1496_s14 + $0x8] sm:$0xff] %v872_v26  ;;  %v862_v56 = vmul.f32 %v1128_v29, %v854_v27 }
 0x106   : > { %879 = vst [vmem:[%s1496_s14] sm:$0xff] %v871_v30  ;;  %v861_v38 = vmul.f32 %v1130_v34, %v853_v31 }
 0x107   : > { %v874_v40 = vadd.f32 %v870_v18, %v862_v56 }
 0x108   : > { %v1132_v45 = vpop.eup %1131  ;;  %v873_v62 = vadd.f32 %v870_v18, %v861_v38 }
 0x109   : > { %v1134_v49 = vpop.eup %1133  ;;  %882 = vst [vmem:[%s1496_s14 + $0x18] sm:$0xff] %v874_v40  ;;  %v864_v51 = vmul.f32 %v1132_v45, %v856_v41 }
 0x10a   : > { %881 = vst [vmem:[%s1496_s14 + $0x10] sm:$0xff] %v873_v62  ;;  %v863_v52 = vmul.f32 %v1134_v49, %v855_v47 }
 0x10b   : > { %v876_v53 = vadd.f32 %v870_v18, %v864_v51 }
 0x10c   : > { %v1136_v55 = vpop.eup %1135  ;;  %v875_v42 = vadd.f32 %v870_v18, %v863_v52 }
 0x10d   : > { %v1138_v25 = vpop.eup %1137  ;;  %884 = vst [vmem:[%s1496_s14 + $0x28] sm:$0xff] %v876_v53  ;;  %v866_v60 = vmul.f32 %v1136_v55, %v858_v54 }
 0x10e   : > { %883 = vst [vmem:[%s1496_s14 + $0x20] sm:$0xff] %v875_v42  ;;  %v865_v61 = vmul.f32 %v1138_v25, %v857_v57 }
 0x10f   : > { %v878_v33 = vadd.f32 %v870_v18, %v866_v60 }
 0x110   : > { %v877_v58 = vadd.f32 %v870_v18, %v865_v61 }
 0x111   : > { %886 = vst [vmem:[%s1496_s14 + $0x38] sm:$0xff] %v878_v33 }
 0x112   : > { %885 = vst [vmem:[%s1496_s14 + $0x30] sm:$0xff] %v877_v58 }
 0x113   : > { %1152 = shalt.err (!%p1149_p5)
}
 0x114   : > { %s1153_s8 = scalar_lea.hbm %s1516_s25, 1024  ;;  %s1157_s11 = scalar_lea.hbm %s1570_s5, 2048 }
 0x115   : > { %p1154_p7 = scmp.ne.s32.totalorder %s1516_s25, %s1153_s8  ;;  %p1158_p12 = scmp.lt.s32.totalorder %s1516_s25, %s1570_s5 }
 0x116   : > { %p1159_p13 = scmp.lt.s32.totalorder %s1157_s11, %s1153_s8 }
 0x117   : > { %p1155_p10 = pnand %p1154_p7, %p1276_p6 }
 0x118   : > { %p1160_p0 = por %p1159_p13, %p1158_p12 }
 0x119   : > { %p1156_p11 = pneg %p1155_p10 }
 0x11b   : > { %p1161_p1 = pnand %p1160_p0, %p1156_p11 }
 0x11d   : > { %1164 = shalt.err (!%p1161_p1)
}
 0x11e   : > { %s1202_s14 = smov 128   ;;  %s1203_s15 = smov 8  }
 0x11f   : > { %1082 = dma.vmem_to_hbm [thread:$0]  (%p1276_p6), %s1518_s16, 1024, %s1516_s25, %s1524_s22, %s1202_s14, %s1202_s14, %s1203_s15  }
 0x120 PF: > { %s916_s17 = sand.u32 1, %s1187_s18   ;;  %p1085_p2 = pnand %p991_p9, %p1280_p8 }
 0x121   : > { %s917_s23 = scalar_lea.sflag [#allocation5], %s916_s17 }
 0x122   : > { %p1086_p3 = pneg %p1085_p2 }
 0x124   : > { %1182 = dma.done.wait (%p1086_p3), %s917_s23, 1024  }
 0x125   : > { %1184 = vsyncadd (%p1086_p3), %s917_s23, 4294966272  ;;  %p15_p4 = scmp.ge.s32.totalorder %s1257_s24, 4   ;;  %s1574_s18 = smov %s1191_s19 }
 0x126   : > { %s1575_s19 = smov %s1195_s20  ;;  %s1576_s20 = smov %s1270_s27 }
 0x127   : > { %s1577_s21 = smov %s1257_s24  ;;  %17 = sbr.rel (!%p15_p4) target bundleno = 3 (0x3), region = 164 }
 0x12c   :  { %922 = vsyncpa [#allocation5], 1 }
 0x12d   :  { %924 = vsyncpa [#allocation5 + $0x1], 1 }

</bundles_post_ra>
